<compile_context>
chip_gen: v6e
topology: v6e:2x2x1
jax: 0.10.0
libtpu: 0.0.40
codegen_flags: <defaults>
</compile_context>

<pallas_src>
import jax
import jax.numpy as jnp
from jax.experimental import pallas as pl
from jax.experimental.pallas import tpu as pltpu


# ----------------------------------------------------------------------------
# Kernel: whole MLP chain fused; grid tiles the batch (lane) dimension only.
# ----------------------------------------------------------------------------
def make_feature_nn_kernel(num_act_layers: int):
    """Kernel computing the full FeatureNN forward for one batch tile.

    Ref order: x_row, (W_0, b_0), (W_1, b_1), ..., W_linear, out_row
      x_row:   (1, TN)            batch tile along lanes
      W_0:     (shallow, 1)       already exp()'d, stored as a column
      b_0:     (1, 1)
      W_i:     (out_i, in_i)      pre-transposed hidden weights
      b_i:     (in_i, 1)
      W_lin:   (last, 1)
      out_row: (1, TN)
    """

    def kernel(*refs):
        x_ref = refs[0]
        layer_refs = refs[1 : 1 + 2 * num_act_layers]
        wl_ref = refs[1 + 2 * num_act_layers]
        o_ref = refs[-1]

        x_row = x_ref[...]                     # (1, TN)

        # --- Layer 0: ExU. K == 1 contraction -> VPU broadcast outer product.
        w0 = layer_refs[0][...]                # (shallow, 1), = exp(W0)^T
        b0 = layer_refs[1][...]                # (1, 1)
        h = jnp.clip((x_row - b0) * w0, 0.0, 1.0)          # (shallow, TN)

        # --- Hidden ReLU layers: MXU matmuls with batch on the lane axis.
        for li in range(1, num_act_layers):
            w = layer_refs[2 * li][...]        # (out, in)
            b = layer_refs[2 * li + 1][...]    # (in, 1) -> broadcasts over batch
            z = jnp.dot(w, h - b, preferred_element_type=jnp.float32)
            h = jnp.maximum(z, 0.0)            # (out, TN)
        # Dropout is identity in eval mode (inference forward pass).
        # TODO(synk): training-mode dropout (stochastic masking via pltpu.prng_*)
        # is intentionally not implemented here.

        # --- Final Linear(last, 1, bias=False): VPU multiply + sublane reduce.
        wl = wl_ref[...]                       # (last, 1)
        o_ref[...] = jnp.sum(h * wl, axis=0, keepdims=True)   # (1, TN) lane-dense

    return kernel


# ----------------------------------------------------------------------------
# Wrapper: builds BlockSpecs / grid and calls pallas_call.
# ----------------------------------------------------------------------------
def _round_up(n, m):
    return ((n + m - 1) // m) * m


def _pick_batch_tile(n, requested):
    """Tile must be a multiple of 128 (lane width); keep grid >= 2 when possible
    so v7x's two TensorCores both get work on the "parallel" batch axis."""
    t = max(128, (int(requested) // 128) * 128)
    n128 = _round_up(max(int(n), 1), 128)
    t = min(t, n128)
    if n128 // t < 2 and n128 >= 256:
        t = max(128, ((n128 // 2) // 128) * 128)
    return t


def feature_nn_forward(x, layer_params, w_linear, *, batch_tile=512):
    """x: (N, 1) f32.
    layer_params: list of (W (in,out), b (in,)) — layer 0 is ExU (in=1), rest ReLU.
    w_linear: (1, last) f32  (torch Linear weight, out_features=1).
    Returns (N, 1) f32.
    """
    N = x.shape[0]
    x = x.astype(jnp.float32)
    num_act_layers = len(layer_params)

    bt = _pick_batch_tile(N, batch_tile)
    N_pad = _round_up(N, bt)
    if N_pad != N:
        x = jnp.pad(x, ((0, N_pad - N), (0, 0)))
    x_row = x.reshape(1, N_pad)                      # batch along lanes

    # --- One-time parameter prep (outside the kernel): exp() hoist + transposes.
    flat_params = []
    w0, b0 = layer_params[0]
    flat_params.append(jnp.exp(w0.astype(jnp.float32)).reshape(-1, 1))   # (shallow, 1)
    flat_params.append(b0.astype(jnp.float32).reshape(1, 1))             # (1, 1)
    for w, b in layer_params[1:]:
        flat_params.append(jnp.transpose(w.astype(jnp.float32)))         # (out, in)
        flat_params.append(b.astype(jnp.float32).reshape(-1, 1))         # (in, 1)
    flat_params.append(w_linear.astype(jnp.float32).reshape(-1, 1))      # (last, 1)

    # Full-array blocks for every (tiny) parameter; constant index_map means
    # Pallas does not re-DMA them across grid steps.
    param_specs = [pl.BlockSpec(p.shape, lambda i: (0, 0)) for p in flat_params]
    in_specs = [pl.BlockSpec((1, bt), lambda i: (0, i))] + param_specs
    out_spec = pl.BlockSpec((1, bt), lambda i: (0, i))

    kernel = make_feature_nn_kernel(num_act_layers)

    y_row = pl.pallas_call(
        kernel,
        out_shape=jax.ShapeDtypeStruct((1, N_pad), jnp.float32),
        grid_spec=pltpu.PrefetchScalarGridSpec(
            num_scalar_prefetch=0,
            grid=(N_pad // bt,),
            in_specs=in_specs,
            out_specs=out_spec,
        ),
        compiler_params=pltpu.CompilerParams(
            dimension_semantics=("parallel",)
        ),
    )(x_row, *flat_params)

    return y_row.reshape(N_pad, 1)[:N]


# ----------------------------------------------------------------------------
# Deterministic parameter initialization (mirrors the torch init intent).
# ----------------------------------------------------------------------------
def trunc_normal(key, shape, mean=0.0, std=1.0):
    return jax.random.truncated_normal(key, -2.0, 2.0, shape, jnp.float32) * std + mean


def xavier_uniform(key, fan_in, fan_out, shape):
    bound = (6.0 / (fan_in + fan_out)) ** 0.5
    return jax.random.uniform(key, shape, jnp.float32, -bound, bound)


def init_feature_nn_params(key, shallow_units, hidden_units):
    """Returns (layer_params, w_linear) matching FeatureNN.__init__ shapes.

    layer_params[i] = (W (in,out), b (in,)); layer 0 is ExU(1, shallow).
    w_linear: (1, last)  (torch Linear weight).
    """
    n_layers = 1 + len(hidden_units)
    keys = jax.random.split(key, 2 * n_layers + 1)

    layer_params = []
    # layer 0: ExULayer(1, shallow_units)
    w0 = trunc_normal(keys[0], (1, shallow_units), mean=4.0, std=0.5)
    b0 = trunc_normal(keys[1], (1,), mean=0.0, std=0.5)
    layer_params.append((w0, b0))

    # hidden ReLU layers
    dims = [shallow_units] + list(hidden_units)
    for li in range(len(hidden_units)):
        fin, fout = dims[li], dims[li + 1]
        w = xavier_uniform(keys[2 + 2 * li], fin, fout, (fin, fout))
        b = trunc_normal(keys[3 + 2 * li], (fin,), std=0.5)
        layer_params.append((w, b))

    # final Linear(last, 1, bias=False): torch weight shape (1, last)
    last = dims[-1]
    w_lin = xavier_uniform(keys[-1], last, 1, (1, last))
    return layer_params, w_lin


# ----------------------------------------------------------------------------
# Pure-JAX reference (original (batch, feature) orientation) for correctness.
# ----------------------------------------------------------------------------
def feature_nn_ref(x, layer_params, w_linear):
    h = x
    for li, (w, b) in enumerate(layer_params):
        if li == 0:
            h = jnp.clip((h - b) @ jnp.exp(w), 0.0, 1.0)
        else:
            h = jnp.maximum((h - b) @ w, 0.0)
    return h @ w_linear.T


if __name__ == "__main__":
    key = jax.random.PRNGKey(0)
    k_param, k_x = jax.random.split(key)

    shallow_units = 32
    hidden_units = (64, 32)
    N = 1024  # batch; tiled by 512 -> grid of 2 (keeps both v7x TCs busy)

    layer_params, w_lin = init_feature_nn_params(k_param, shallow_units, hidden_units)
    x = jax.random.normal(k_x, (N, 1), jnp.float32)

    y = feature_nn_forward(x, layer_params, w_lin, batch_tile=512)
    y = jax.block_until_ready(y)

    y_ref = feature_nn_ref(x, layer_params, w_lin)
    assert y.shape == (N, 1)
    assert float(jnp.max(jnp.abs(y - y_ref))) < 1e-4

    print("KERNEL_OK")
</pallas_src>

<mosaic_0001>
module attributes {stable_mosaic.version = 11 : i64} {
  func.func @kernel(%arg0: i32, %arg1: memref<1x512xf32, #tpu.memory_space<vmem>>, %arg2: memref<32x1xf32, #tpu.memory_space<vmem>>, %arg3: memref<1x1xf32, #tpu.memory_space<vmem>>, %arg4: memref<64x32xf32, #tpu.memory_space<vmem>>, %arg5: memref<32x1xf32, #tpu.memory_space<vmem>>, %arg6: memref<32x64xf32, #tpu.memory_space<vmem>>, %arg7: memref<64x1xf32, #tpu.memory_space<vmem>>, %arg8: memref<32x1xf32, #tpu.memory_space<vmem>>, %arg9: memref<1x512xf32, #tpu.memory_space<vmem>>) attributes {dimension_semantics = [#tpu.dimension_semantics<parallel>], iteration_bounds = array<i64: 2>, scalar_prefetch = 0 : i64, scratch_operands = 0 : i64, tpu.core_type = #tpu.core_type<tc>, window_params = [{transform_indices = @transform_0, window_bounds = array<i64: 1, 512>}, {pipeline_mode = #tpu.pipeline_mode<synchronous>, transform_indices = @transform_1, window_bounds = array<i64: 32, 1>}, {pipeline_mode = #tpu.pipeline_mode<synchronous>, transform_indices = @transform_2, window_bounds = array<i64: 1, 1>}, {pipeline_mode = #tpu.pipeline_mode<synchronous>, transform_indices = @transform_3, window_bounds = array<i64: 64, 32>}, {pipeline_mode = #tpu.pipeline_mode<synchronous>, transform_indices = @transform_4, window_bounds = array<i64: 32, 1>}, {pipeline_mode = #tpu.pipeline_mode<synchronous>, transform_indices = @transform_5, window_bounds = array<i64: 32, 64>}, {pipeline_mode = #tpu.pipeline_mode<synchronous>, transform_indices = @transform_6, window_bounds = array<i64: 64, 1>}, {pipeline_mode = #tpu.pipeline_mode<synchronous>, transform_indices = @transform_7, window_bounds = array<i64: 32, 1>}, {transform_indices = @transform_8, window_bounds = array<i64: 1, 512>}]} {
    %c0 = arith.constant 0 : index
    %c0_0 = arith.constant 0 : index
    %0 = vector.load %arg1[%c0, %c0_0] : memref<1x512xf32, #tpu.memory_space<vmem>>, vector<1x512xf32>
    %c0_1 = arith.constant 0 : index
    %c0_2 = arith.constant 0 : index
    %1 = vector.load %arg2[%c0_1, %c0_2] : memref<32x1xf32, #tpu.memory_space<vmem>>, vector<32x1xf32>
    %c0_3 = arith.constant 0 : index
    %c0_4 = arith.constant 0 : index
    %2 = vector.load %arg3[%c0_3, %c0_4] : memref<1x1xf32, #tpu.memory_space<vmem>>, vector<1x1xf32>
    %3 = vector.broadcast %2 : vector<1x1xf32> to vector<1x512xf32>
    %4 = arith.subf %0, %3 : vector<1x512xf32>
    %5 = vector.broadcast %4 : vector<1x512xf32> to vector<32x512xf32>
    %6 = vector.broadcast %1 : vector<32x1xf32> to vector<32x512xf32>
    %7 = arith.mulf %5, %6 : vector<32x512xf32>
    %cst = arith.constant 0.000000e+00 : f32
    %cst_5 = arith.constant 1.000000e+00 : f32
    %8 = vector.broadcast %cst : f32 to vector<32x512xf32>
    %9 = arith.maximumf %8, %7 : vector<32x512xf32>
    %10 = vector.broadcast %cst_5 : f32 to vector<32x512xf32>
    %11 = arith.minimumf %10, %9 : vector<32x512xf32>
    %c0_6 = arith.constant 0 : index
    %c0_7 = arith.constant 0 : index
    %12 = vector.load %arg4[%c0_6, %c0_7] : memref<64x32xf32, #tpu.memory_space<vmem>>, vector<64x32xf32>
    %c0_8 = arith.constant 0 : index
    %c0_9 = arith.constant 0 : index
    %13 = vector.load %arg5[%c0_8, %c0_9] : memref<32x1xf32, #tpu.memory_space<vmem>>, vector<32x1xf32>
    %14 = vector.broadcast %13 : vector<32x1xf32> to vector<32x512xf32>
    %15 = arith.subf %11, %14 : vector<32x512xf32>
    %cst_10 = arith.constant dense<0.000000e+00> : vector<64x512xf32>
    %16 = tpu.matmul %12, %15, %cst_10 {dimension_numbers = #tpu.dot_dimension_numbers<[1], [0], [0], [1], [0, 0, 1, 1], [], []>} : vector<64x32xf32>, vector<32x512xf32>, vector<64x512xf32> -> vector<64x512xf32>
    %cst_11 = arith.constant 0.000000e+00 : f32
    %17 = vector.broadcast %cst_11 : f32 to vector<64x512xf32>
    %18 = arith.maximumf %16, %17 : vector<64x512xf32>
    %c0_12 = arith.constant 0 : index
    %c0_13 = arith.constant 0 : index
    %19 = vector.load %arg6[%c0_12, %c0_13] : memref<32x64xf32, #tpu.memory_space<vmem>>, vector<32x64xf32>
    %c0_14 = arith.constant 0 : index
    %c0_15 = arith.constant 0 : index
    %20 = vector.load %arg7[%c0_14, %c0_15] : memref<64x1xf32, #tpu.memory_space<vmem>>, vector<64x1xf32>
    %21 = vector.broadcast %20 : vector<64x1xf32> to vector<64x512xf32>
    %22 = arith.subf %18, %21 : vector<64x512xf32>
    %cst_16 = arith.constant dense<0.000000e+00> : vector<32x512xf32>
    %23 = tpu.matmul %19, %22, %cst_16 {dimension_numbers = #tpu.dot_dimension_numbers<[1], [0], [0], [1], [0, 0, 1, 1], [], []>} : vector<32x64xf32>, vector<64x512xf32>, vector<32x512xf32> -> vector<32x512xf32>
    %cst_17 = arith.constant 0.000000e+00 : f32
    %24 = vector.broadcast %cst_17 : f32 to vector<32x512xf32>
    %25 = arith.maximumf %23, %24 : vector<32x512xf32>
    %c0_18 = arith.constant 0 : index
    %c0_19 = arith.constant 0 : index
    %26 = vector.load %arg8[%c0_18, %c0_19] : memref<32x1xf32, #tpu.memory_space<vmem>>, vector<32x1xf32>
    %27 = vector.broadcast %26 : vector<32x1xf32> to vector<32x512xf32>
    %28 = arith.mulf %25, %27 : vector<32x512xf32>
    %cst_20 = arith.constant dense<0.000000e+00> : vector<512xf32>
    %29 = vector.multi_reduction <add>, %28, %cst_20 [0] : vector<32x512xf32> to vector<512xf32>
    %30 = vector.shape_cast %29 : vector<512xf32> to vector<1x512xf32>
    %c0_21 = arith.constant 0 : index
    %c0_22 = arith.constant 0 : index
    %31 = vector.load %arg9[%c0_21, %c0_22] : memref<1x512xf32, #tpu.memory_space<vmem>>, vector<1x512xf32>
    tpu.vector_store %arg9[%c0_21, %c0_22], %30 {strides = array<i32>} : memref<1x512xf32, #tpu.memory_space<vmem>>, vector<1x512xf32>,
    return
  }
  func.func @transform_0(%arg0: i32) -> (i32, i32) {
    %c0_i32 = arith.constant 0 : i32
    %c0_i32_0 = arith.constant 0 : i32
    return %c0_i32, %arg0 : i32, i32
  }
  func.func @transform_1(%arg0: i32) -> (i32, i32) {
    %c0_i32 = arith.constant 0 : i32
    %c0_i32_0 = arith.constant 0 : i32
    %c0_i32_1 = arith.constant 0 : i32
    return %c0_i32, %c0_i32_0 : i32, i32
  }
  func.func @transform_2(%arg0: i32) -> (i32, i32) {
    %c0_i32 = arith.constant 0 : i32
    %c0_i32_0 = arith.constant 0 : i32
    %c0_i32_1 = arith.constant 0 : i32
    return %c0_i32, %c0_i32_0 : i32, i32
  }
  func.func @transform_3(%arg0: i32) -> (i32, i32) {
    %c0_i32 = arith.constant 0 : i32
    %c0_i32_0 = arith.constant 0 : i32
    %c0_i32_1 = arith.constant 0 : i32
    return %c0_i32, %c0_i32_0 : i32, i32
  }
  func.func @transform_4(%arg0: i32) -> (i32, i32) {
    %c0_i32 = arith.constant 0 : i32
    %c0_i32_0 = arith.constant 0 : i32
    %c0_i32_1 = arith.constant 0 : i32
    return %c0_i32, %c0_i32_0 : i32, i32
  }
  func.func @transform_5(%arg0: i32) -> (i32, i32) {
    %c0_i32 = arith.constant 0 : i32
    %c0_i32_0 = arith.constant 0 : i32
    %c0_i32_1 = arith.constant 0 : i32
    return %c0_i32, %c0_i32_0 : i32, i32
  }
  func.func @transform_6(%arg0: i32) -> (i32, i32) {
    %c0_i32 = arith.constant 0 : i32
    %c0_i32_0 = arith.constant 0 : i32
    %c0_i32_1 = arith.constant 0 : i32
    return %c0_i32, %c0_i32_0 : i32, i32
  }
  func.func @transform_7(%arg0: i32) -> (i32, i32) {
    %c0_i32 = arith.constant 0 : i32
    %c0_i32_0 = arith.constant 0 : i32
    %c0_i32_1 = arith.constant 0 : i32
    return %c0_i32, %c0_i32_0 : i32, i32
  }
  func.func @transform_8(%arg0: i32) -> (i32, i32) {
    %c0_i32 = arith.constant 0 : i32
    %c0_i32_0 = arith.constant 0 : i32
    return %c0_i32, %arg0 : i32, i32
  }
}

</mosaic_0001>

<bundles_post_ra>
// kernel: tpu_custom_call.1
= control target key start
LH: loop header
LB: loop body
LE: loop exit
PB: predicated region body
PF: predicated region fallthrough
CT: control target
= control target key end

     0   :  { %s1701_s0 = inlined_call_operand.vmem [shape: f32[1,1024], index: 0, kind: input, shape index: {}]   ;;  %s1702_s1 = inlined_call_operand.vmem [shape: f32[32,1], index: 1, kind: input, shape index: {}]   ;;  %s1703_s2 = inlined_call_operand.<no memory space> [shape: f32[1,1], index: 2, kind: input, shape index: {}]   ;;  %s1704_s3 = inlined_call_operand.vmem [shape: f32[64,32], index: 3, kind: input, shape index: {}]   ;;  %s1705_s4 = inlined_call_operand.vmem [shape: f32[32,1], index: 4, kind: input, shape index: {}]   ;;  %s1706_s5 = inlined_call_operand.vmem [shape: f32[32,64], index: 5, kind: input, shape index: {}]   ;;  %s1707_s6 = inlined_call_operand.vmem [shape: f32[64,1], index: 6, kind: input, shape index: {}]   ;;  %s1708_s7 = inlined_call_operand.vmem [shape: f32[32,1], index: 7, kind: input, shape index: {}]   ;;  %s1709_s8 = inlined_call_operand.hbm [shape: f32[1,1024], index: 8, kind: output, shape index: {}]  }
   0x1   :  { %v13_v0 = vstv %s1703_s2 }
   0x2   :  { %14 = vst [vmem:[#allocation2] sm:$0x1] %v13_v0 }
   0x3   :  { %15 = vsyncpa [#allocation4], 0 }
   0x4   :  { %17 = vsyncpa [#allocation4 + $0x1], 0  ;;  %s1408_s29 = smov 0   ;;  %s1410_s30 = smov 0  }
   0x5   :  { %s1412_s9 = smov 0   ;;  %s1414_s10 = smov 0  }
   0x6 LB: > { %s1429_s2 = sadd.s32 4294967295, %s1354_s10   ;;  %s1214_s11 = sadd.s32 4294967294, %s1354_s10   ;;  %s1354_s10 = sphi %s1414_s10, %s1715_s10   ;;  %s1350_s9 = sphi %s1412_s9, %s1714_s9   ;;  %s1346_s30 = sphi %s1410_s30, %s1713_s30   ;;  %s1342_s29 = sphi %s1408_s29, %s1712_s29  }
   0x7   : > { %s1433_s12 = sadd.s32 1, %s1354_s10   ;;  %s203_s13 = sadd.s32 1, %s1350_s9 }
   0x8   : > { %s200_s14 = ssub.s32 %s1354_s10, %s1433_s12  ;;  %p213_p0 = scmp.ne.s32.totalorder %s1350_s9, %s1346_s30 }
   0x9   : > { %p201_p1 = scmp.eq.s32.totalorder %s200_s14, 0  ;;  %p214_p2 = scmp.eq.s32.totalorder %s1429_s2, 1 }
   0xa   : > { %p219_p3 = scmp.ne.s32.totalorder %s1346_s30, %s1342_s29  ;;  %p220_p4 = scmp.eq.s32.totalorder %s1214_s11, 1 }
   0xb   : > { %s1444_s15 = scalar_select %p201_p1, %s1350_s9, %s203_s13  }
   0xc   : > { %p1446_p5 = por %p214_p2, %p213_p0  ;;  %p1450_p6 = por %p220_p4, %p219_p3 }
   0xd   : > { %p1217_p7 = scmp.ge.s32.totalorder %s1354_s10, 1  ;;  %p267_p8 = scmp.lt.s32.totalorder %s1354_s10, 3 }
   0xf   : > { %p268_p9 = pnand %p1217_p7, %p267_p8 }
  0x10   : > { %s1219_s13 = sshll.u32 (!%p268_p9), %s1429_s2, 2  ;;  %s1249_s18 = sshll.u32 (!%p268_p9), %s1429_s2, 6 }
  0x11   : > { %271 = sbr.rel (%p268_p9) target bundleno = 663 (0x297), region = 52  ;;  %p301_p10 = scmp.lt.s32.totalorder (!%p268_p9), %s1219_s13, 7 }
  0x12   : > { %s1156_s23 = scalar_lea.hbm (!%p268_p9), %s1709_s8, %s1249_s18  ;;  %s1359_s26 = smov (!%p268_p9), [#allocation3]  }
  0x13   : > { %s1298_s2 = sshll.u32 (!%p268_p9), %s1359_s26, 4  ;;  %s1299_s2 = int_to_ptr.vmem [resolvable:$false] %s1298_s2 }
  0x14   : > { %s1300_s27 = scalar_lea.vmem (!%p268_p9), %s1299_s2, 128 }
  0x16   : > { %v311_v1 = vld [vmem:[#allocation2] sm:$0x1]  ;;  %v309_v2 = vld [vmem:[%s1702_s1 + $0x10] sm:$0xff]  ;;  %v1356_v3 = vmov 0   ;;  %v310_v4 = vld [vmem:[%s1702_s1 + $0x18] sm:$0xff]  ;;  %v1357_v16 = vmov 0.0   ;;  %v317_v24 = vlaneseq }
  0x17   : > { %1293 = vset.pattern.permute.xlu1 %v1356_v3  ;;  %1292 = vset.pattern.permute.xlu0 %v1356_v3  ;;  %v308_v5 = vld [vmem:[%s1702_s1 + $0x8] sm:$0xff]  ;;  %v422_v6 = vld [vmem:[%s1705_s4 + $0x18] sm:$0xff]  ;;  %v307_v7 = vld [vmem:[%s1702_s1] sm:$0xff]  ;;  %s1717_s13 = smov (!%p301_p10, %s1219_s13), 7  ;;  %vm459_vm0 = vcmask 261120   ;;  %vm826_vm1 = vcmask 523264  }
  0x18   : > { %314 = vperm.xlu0 %1292, %v311_v1   ;;  %355 = vperm.xlu1 %1293, %v309_v2   ;;  %v420_v8 = vld [vmem:[%s1705_s4 + $0x8] sm:$0xff]  ;;  %v421_v9 = vld [vmem:[%s1705_s4 + $0x10] sm:$0xff]  ;;  %v753_v10 = vld [vmem:[%s1707_s6 + $0x38] sm:$0xff]  ;;  %v1520_v25 = vshrl.u32 %v317_v24, 7  ;;  %s303_s19 = scalar_lea.vmem %s1701_s0, %s1717_s13  ;;  %s297_s13 = sand.u32 1, %s1346_s30   ;;  %vm1140_vm2 = vcmp.lt.s32.totalorder %v317_v24, 512 }
  0x19   : > { %v419_v11 = vld [vmem:[%s1705_s4] sm:$0xff]  ;;  %v751_v12 = vld [vmem:[%s1707_s6 + $0x28] sm:$0xff]  ;;  %v752_v13 = vld [vmem:[%s1707_s6 + $0x30] sm:$0xff]  ;;  %548 = vmatprep.mubr.f32.mxu0 %v1357_v16  ;;  %661 = vmatprep.mubr.f32.mxu1 %v1357_v16  ;;  %s1218_s14 = sshll.u32 %s297_s13, 2  ;;  %s1144_s24 = scalar_lea.sflag [#allocation4], %s297_s13 }
  0x1a   : > { %v749_v14 = vld [vmem:[%s1707_s6 + $0x18] sm:$0xff]  ;;  %v750_v15 = vld [vmem:[%s1707_s6 + $0x20] sm:$0xff]  ;;  %v747_v17 = vld [vmem:[%s1707_s6 + $0x8] sm:$0xff]  ;;  %v319_v26 = vsub.s32 0, %v1520_v25  ;;  %v329_v29 = vsub.s32 1, %v1520_v25  ;;  %v333_v30 = vsub.s32 2, %v1520_v25 }
  0x1b   : > { %v748_v18 = vld [vmem:[%s1707_s6 + $0x10] sm:$0xff]  ;;  %v1033_v19 = vld [vmem:[%s1708_s7] sm:$0xff]  ;;  %v1034_v22 = vld [vmem:[%s1708_s7 + $0x8] sm:$0xff]  ;;  %v337_v31 = vsub.s32 3, %v1520_v25 }
  0x1c   : > { %360 = vperm.xlu0 %1292, %v310_v4   ;;  %350 = vperm.xlu1 %1293, %v308_v5   ;;  %v746_v20 = vld [vmem:[%s1707_s6] sm:$0xff]  ;;  %v1035_v21 = vld [vmem:[%s1708_s7 + $0x10] sm:$0xff]  ;;  %v1036_v23 = vld [vmem:[%s1708_s7 + $0x18] sm:$0xff] }
  0x1d   : > { %v306_v28 = vld [vmem:[%s303_s19] sm:$0xf]  ;;  %s299_s19 = scalar_lea.vmem [#allocation3], %s1218_s14 }
  0x1e   : > { %s1158_s20 = sshll.u32 %s299_s19, 4  ;;  %s1159_s20 = int_to_ptr.vmem [resolvable:$true] %s1158_s20 }
  0x1f   : > { %s1294_s25 = scalar_lea.vmem %s1159_s20, 64  ;;  %p1301_p0 = scmp.lt.s32.totalorder %s1159_s20, %s1299_s2 }
  0x20   : > { %440 = vperm.xlu1 %1293, %v422_v6   ;;  %345 = vperm.xlu0 %1292, %v307_v7   ;;  %p1295_p11 = scmp.ne.s32.totalorder %s1159_s20, %s1294_s25  ;;  %p1302_p1 = scmp.lt.s32.totalorder %s1300_s27, %s1294_s25 }
  0x22   : > { %p1296_p12 = pnand %p1295_p11, %p1446_p5  ;;  %p1303_p2 = por %p1302_p1, %p1301_p0 }
  0x24   : > { %430 = vperm.xlu1 %1293, %v420_v8   ;;  %435 = vperm.xlu0 %1292, %v421_v9   ;;  %p1297_p13 = pneg %p1296_p12 }
  0x26   : > { %p1304_p3 = pnand %p1303_p2, %p1297_p13 }
  0x28   : > { %791 = vperm.xlu1 %1293, %v753_v10   ;;  %425 = vperm.xlu0 %1292, %v419_v11  }
  0x2c   : > { %781 = vperm.xlu1 %1293, %v751_v12   ;;  %786 = vperm.xlu0 %1292, %v752_v13  }
  0x30   : > { %771 = vperm.xlu1 %1293, %v749_v14   ;;  %776 = vperm.xlu0 %1292, %v750_v15  }
  0x34   : > { %761 = vperm.xlu1 %1293, %v747_v17   ;;  %766 = vperm.xlu0 %1292, %v748_v18  }
  0x38   : > { %1039 = vperm.xlu1 %1293, %v1033_v19   ;;  %756 = vperm.xlu0 %1292, %v746_v20  }
  0x3c   : > { %1049 = vperm.xlu1 %1293, %v1035_v21   ;;  %1044 = vperm.xlu0 %1292, %v1034_v22  }
  0x40   : > { %1054 = vperm.xlu0 %1292, %v1036_v23  }
  0x93   : > { %v315_v27 = vpop.permute.xlu0 %314  ;;  %v356_v33 = vpop.permute.xlu1 %355 }
  0x94   : > { %v320_v32 = vrot.slane %v315_v27, %v319_v26 }
  0x96   : > { %v321_v34 = vsub.f32 %v306_v28, %v320_v32 }
  0x97   : > { %v361_v35 = vpop.permute.xlu0 %360  ;;  %v351_v44 = vpop.permute.xlu1 %350 }
  0x98   : > { %v326_v36 = vrot.slane %v321_v34, %v319_v26  ;;  %v330_v37 = vrot.slane %v321_v34, %v329_v29  ;;  %v334_v38 = vrot.slane %v321_v34, %v333_v30  ;;  %v338_v39 = vrot.slane %v321_v34, %v337_v31 }
  0x9a   : > { %v371_v40 = vmul.f32 %v356_v33, %v326_v36  ;;  %v372_v41 = vmul.f32 %v356_v33, %v330_v37  ;;  %v373_v42 = vmul.f32 %v356_v33, %v334_v38  ;;  %v374_v43 = vmul.f32 %v356_v33, %v338_v39 }
  0x9b   : > { %v367_v45 = vmul.f32 %v351_v44, %v326_v36  ;;  %v368_v46 = vmul.f32 %v351_v44, %v330_v37  ;;  %v346_v47 = vpop.permute.xlu0 %345  ;;  %v369_v48 = vmul.f32 %v351_v44, %v334_v38  ;;  %v370_v49 = vmul.f32 %v351_v44, %v338_v39  ;;  %v441_v0 = vpop.permute.xlu1 %440 }
  0x9c   : > { %v387_v50 = vmax.f32 %v371_v40, 0.0  ;;  %v388_v51 = vmax.f32 %v372_v41, 0.0  ;;  %v389_v52 = vmax.f32 %v373_v42, 0.0  ;;  %v390_v53 = vmax.f32 %v374_v43, 0.0 }
  0x9d   : > { %v383_v54 = vmax.f32 %v367_v45, 0.0  ;;  %v384_v55 = vmax.f32 %v368_v46, 0.0  ;;  %v363_v56 = vmul.f32 %v346_v47, %v326_v36  ;;  %v364_v57 = vmul.f32 %v346_v47, %v330_v37 }
  0x9e   : > { %v376_v58 = vmul.f32 %v361_v35, %v330_v37  ;;  %v378_v59 = vmul.f32 %v361_v35, %v338_v39  ;;  %v375_v60 = vmul.f32 %v361_v35, %v326_v36  ;;  %v377_v61 = vmul.f32 %v361_v35, %v334_v38 }
  0x9f   : > { %v385_v62 = vmax.f32 %v369_v48, 0.0  ;;  %v386_v63 = vmax.f32 %v370_v49, 0.0  ;;  %v365_v1 = vmul.f32 %v346_v47, %v334_v38  ;;  %v366_v2 = vmul.f32 %v346_v47, %v338_v39  ;;  %v436_v9 = vpop.permute.xlu0 %435  ;;  %v431_v27 = vpop.permute.xlu1 %430  ;;  %v411_v49 = vld [vmem:[%s1704_s3] sm:$0xff] }
  0xa0   : > { %v392_v3 = vmax.f32 %v376_v58, 0.0  ;;  %v394_v4 = vmax.f32 %v378_v59, 0.0  ;;  %v391_v5 = vmax.f32 %v375_v60, 0.0  ;;  %v393_v6 = vmax.f32 %v377_v61, 0.0 }
  0xa1   : > { %v379_v7 = vmax.f32 %v363_v56, 0.0  ;;  %v380_v8 = vmax.f32 %v364_v57, 0.0  ;;  %v404_v10 = vmin.f32 %v388_v51, 1.0  ;;  %v406_v11 = vmin.f32 %v390_v53, 1.0  ;;  %v413_v51 = vld [vmem:[%s1704_s3 + $0x10] sm:$0xff]  ;;  %v415_v53 = vld [vmem:[%s1704_s3 + $0x20] sm:$0xff] }
  0xa2   : > { %v408_v12 = vmin.f32 %v392_v3, 1.0  ;;  %v410_v13 = vmin.f32 %v394_v4, 1.0  ;;  %v407_v14 = vmin.f32 %v391_v5, 1.0  ;;  %v409_v15 = vmin.f32 %v393_v6, 1.0  ;;  %v418_v56 = vld [vmem:[%s1704_s3 + $0x38] sm:$0xff] }
  0xa3   : > { %v381_v17 = vmax.f32 %v365_v1, 0.0  ;;  %v382_v18 = vmax.f32 %v366_v2, 0.0  ;;  %v403_v19 = vmin.f32 %v387_v50, 1.0  ;;  %v405_v20 = vmin.f32 %v389_v52, 1.0  ;;  %v426_v34 = vpop.permute.xlu0 %425  ;;  %v412_v50 = vld [vmem:[%s1704_s3 + $0x8] sm:$0xff]  ;;  %v414_v52 = vld [vmem:[%s1704_s3 + $0x18] sm:$0xff] }
  0xa4   : > { %v456_v21 = vsub.f32 %v408_v12, %v441_v0  ;;  %v458_v22 = vsub.f32 %v410_v13, %v441_v0  ;;  %v455_v23 = vsub.f32 %v407_v14, %v441_v0  ;;  %v457_v26 = vsub.f32 %v409_v15, %v441_v0 }
  0xa5   : > { %v400_v28 = vmin.f32 %v384_v55, 1.0  ;;  %v402_v29 = vmin.f32 %v386_v63, 1.0  ;;  %v399_v30 = vmin.f32 %v383_v54, 1.0  ;;  %v401_v31 = vmin.f32 %v385_v62, 1.0  ;;  %v416_v54 = vld [vmem:[%s1704_s3 + $0x28] sm:$0xff]  ;;  %v417_v55 = vld [vmem:[%s1704_s3 + $0x30] sm:$0xff] }
  0xa6   : > { %508 = vmatprep.subr.mxu0 %v456_v21  ;;  %621 = vmatprep.subr.mxu1 %v458_v22  ;;  %v452_v32 = vsub.f32 %v404_v10, %v436_v9  ;;  %v454_v33 = vsub.f32 %v406_v11, %v436_v9  ;;  %v451_v35 = vsub.f32 %v403_v19, %v436_v9  ;;  %v396_v39 = vmin.f32 %v380_v8, 1.0 }
  0xa7   : > { %509 = vmatpush1.msra.mxu0 %v455_v23  ;;  %622 = vmatpush1.msra.mxu1 %v457_v26  ;;  %v453_v36 = vsub.f32 %v405_v20, %v436_v9  ;;  %v448_v37 = vsub.f32 %v400_v28, %v431_v27  ;;  %v450_v38 = vsub.f32 %v402_v29, %v431_v27  ;;  %v398_v40 = vmin.f32 %v382_v18, 1.0  ;;  %v792_v20 = vpop.permute.xlu1 %791  ;;  %v787_v23 = vpop.permute.xlu0 %786 }
  0xa8   : > { %510 = vmatprep.subr.mxu0 %v452_v32  ;;  %623 = vmatprep.subr.mxu1 %v454_v33  ;;  %v447_v41 = vsub.f32 %v399_v30, %v431_v27  ;;  %v449_v42 = vsub.f32 %v401_v31, %v431_v27  ;;  %v395_v43 = vmin.f32 %v379_v7, 1.0  ;;  %v397_v44 = vmin.f32 %v381_v17, 1.0 }
  0xa9   : > { %511 = vmatpush1.msra.mxu0 %v451_v35  ;;  %624 = vmatpush1.msra.mxu1 %v453_v36  ;;  %v444_v45 = vsub.f32 %v396_v39, %v426_v34  ;;  %v446_v46 = vsub.f32 %v398_v40, %v426_v34 }
  0xaa   : > { %512 = vmatprep.subr.mxu0 %v448_v37  ;;  %625 = vmatprep.subr.mxu1 %v450_v38  ;;  %v443_v47 = vsub.f32 %v395_v43, %v426_v34  ;;  %v445_v48 = vsub.f32 %v397_v44, %v426_v34 }
  0xab   : > { %513 = vmatpush1.msra.mxu0 %v447_v41  ;;  %626 = vmatpush1.msra.mxu1 %v449_v42  ;;  %v782_v36 = vpop.permute.xlu1 %781  ;;  %v777_v43 = vpop.permute.xlu0 %776 }
  0xac   : > { %514 = vmatprep.subr.mxu0 %v444_v45  ;;  %627 = vmatprep.subr.mxu1 %v446_v46 }
  0xad   : > { %515 = vmatpush1.msra.mxu0 %v443_v47  ;;  %628 = vmatpush1.msra.mxu1 %v445_v48 }
  0xae   : > { %1220 = vmatmul.mubr.msk.f32.vlgmr.msra.gmra.mxu0 %vm459_vm0, %v411_v49  ;;  %1228 = vmatmul.mubr.msk.f32.vlgmr.msra.gmra.mxu1 %vm459_vm0, %v411_v49 }
  0xaf   : > { %554 = vmatprep.mubr.f32.mxu0 %v1357_v16  ;;  %667 = vmatprep.mubr.f32.mxu1 %v1357_v16 }
  0xb2   : > { %1221 = vmatmul.mubr.msk.f32.gmra.mxu0 %vm459_vm0, %v412_v50  ;;  %1229 = vmatmul.mubr.msk.f32.gmra.mxu1 %vm459_vm0, %v412_v50 }
  0xb3   : > { %560 = vmatprep.mubr.f32.mxu0 %v1357_v16  ;;  %673 = vmatprep.mubr.f32.mxu1 %v1357_v16 }
  0xb6   : > { %1222 = vmatmul.mubr.msk.f32.gmra.mxu0 %vm459_vm0, %v413_v51  ;;  %1230 = vmatmul.mubr.msk.f32.gmra.mxu1 %vm459_vm0, %v413_v51 }
  0xb7   : > { %566 = vmatprep.mubr.f32.mxu0 %v1357_v16  ;;  %679 = vmatprep.mubr.f32.mxu1 %v1357_v16 }
  0xba   : > { %1223 = vmatmul.mubr.msk.f32.gmra.mxu0 %vm459_vm0, %v414_v52  ;;  %1231 = vmatmul.mubr.msk.f32.gmra.mxu1 %vm459_vm0, %v414_v52 }
  0xbb   : > { %572 = vmatprep.mubr.f32.mxu0 %v1357_v16  ;;  %685 = vmatprep.mubr.f32.mxu1 %v1357_v16 }
  0xbe   : > { %1224 = vmatmul.mubr.msk.f32.gmra.mxu0 %vm459_vm0, %v415_v53  ;;  %1232 = vmatmul.mubr.msk.f32.gmra.mxu1 %vm459_vm0, %v415_v53 }
  0xbf   : > { %578 = vmatprep.mubr.f32.mxu0 %v1357_v16  ;;  %691 = vmatprep.mubr.f32.mxu1 %v1357_v16 }
  0xc2   : > { %1225 = vmatmul.mubr.msk.f32.gmra.mxu0 %vm459_vm0, %v416_v54  ;;  %1233 = vmatmul.mubr.msk.f32.gmra.mxu1 %vm459_vm0, %v416_v54 }
  0xc3   : > { %584 = vmatprep.mubr.f32.mxu0 %v1357_v16  ;;  %697 = vmatprep.mubr.f32.mxu1 %v1357_v16 }
  0xc6   : > { %1226 = vmatmul.mubr.msk.f32.gmra.mxu0 %vm459_vm0, %v417_v55  ;;  %1234 = vmatmul.mubr.msk.f32.gmra.mxu1 %vm459_vm0, %v417_v55 }
  0xc7   : > { %590 = vmatprep.mubr.f32.mxu0 %v1357_v16  ;;  %703 = vmatprep.mubr.f32.mxu1 %v1357_v16 }
  0xca   : > { %1227 = vmatmul.mubr.msk.f32.gmra.mxu0 %vm459_vm0, %v418_v56  ;;  %1235 = vmatmul.mubr.msk.f32.gmra.mxu1 %vm459_vm0, %v418_v56 }
  0xcb   : > { %903 = vmatprep.mubr.f32.mxu0 %v1357_v16  ;;  %992 = vmatprep.mubr.f32.mxu1 %v1357_v16 }
 0x16e   : > { %v1585_v57 = vpop.f32.mrf.mxu0  ;;  %v1587_v58 = vpop.f32.mrf.mxu1 }
 0x170   : > { %v1589_v59 = vpop.f32.mrf.mxu0  ;;  %v1591_v60 = vpop.f32.mrf.mxu1 }
 0x172   : > { %v1593_v61 = vpop.f32.mrf.mxu0  ;;  %v1595_v62 = vpop.f32.mrf.mxu1 }
 0x174   : > { %v1597_v63 = vpop.f32.mrf.mxu0  ;;  %v1599_v0 = vpop.f32.mrf.mxu1 }
 0x176   : > { %v1601_v1 = vpop.f32.mrf.mxu0  ;;  %v1603_v2 = vpop.f32.mrf.mxu1 }
 0x178   : > { %v1605_v3 = vpop.f32.mrf.mxu0  ;;  %v1607_v4 = vpop.f32.mrf.mxu1 }
 0x17a   : > { %v1609_v5 = vpop.f32.mrf.mxu0  ;;  %v1611_v6 = vpop.f32.mrf.mxu1 }
 0x17c   : > { %v1613_v7 = vpop.f32.mrf.mxu0  ;;  %v1615_v8 = vpop.f32.mrf.mxu1 }
 0x17d   : > { %v723_v56 = vmax.f32 %v1613_v7, 0.0 }
 0x17e   : > { %v1617_v9 = vpop.f32.mrf.mxu0  ;;  %v1619_v10 = vpop.f32.mrf.mxu1 }
 0x17f   : > { %v726_v52 = vmax.f32 %v1617_v9, 0.0  ;;  %v728_v53 = vmax.f32 %v1619_v10, 0.0  ;;  %v719_v10 = vmax.f32 %v1605_v3, 0.0 }
 0x180   : > { %v576_v11 = vpop.f32.mrf.mxu0  ;;  %v689_v12 = vpop.f32.mrf.mxu1 }
 0x181   : > { %v727_v48 = vmax.f32 %v576_v11, 0.0  ;;  %v729_v49 = vmax.f32 %v689_v12, 0.0  ;;  %v772_v11 = vpop.permute.xlu1 %771  ;;  %v722_v12 = vmax.f32 %v1609_v5, 0.0  ;;  %v810_v5 = vsub.f32 %v726_v52, %v777_v43 }
 0x182   : > { %v580_v13 = vpop.f32.mrf.mxu0  ;;  %v693_v14 = vpop.f32.mrf.mxu1  ;;  %v807_v3 = vsub.f32 %v723_v56, %v772_v11 }
 0x183   : > { %v730_v44 = vmax.f32 %v580_v13, 0.0  ;;  %v732_v45 = vmax.f32 %v693_v14, 0.0  ;;  %v725_v13 = vmax.f32 %v1615_v8, 0.0  ;;  %v811_v7 = vsub.f32 %v727_v48, %v777_v43  ;;  %v767_v8 = vpop.permute.xlu0 %766 }
 0x184   : > { %v582_v15 = vpop.f32.mrf.mxu0  ;;  %v695_v17 = vpop.f32.mrf.mxu1 }
 0x185   : > { %v731_v39 = vmax.f32 %v582_v15, 0.0  ;;  %v733_v40 = vmax.f32 %v695_v17, 0.0  ;;  %v724_v17 = vmax.f32 %v1611_v6, 0.0  ;;  %v814_v9 = vsub.f32 %v730_v44, %v782_v36 }
 0x186   : > { %v586_v18 = vpop.f32.mrf.mxu0  ;;  %v699_v19 = vpop.f32.mrf.mxu1  ;;  %v715_v6 = vmax.f32 %v1597_v63, 0.0 }
 0x187   : > { %v734_v37 = vmax.f32 %v586_v18, 0.0  ;;  %v736_v38 = vmax.f32 %v699_v19, 0.0  ;;  %v815_v14 = vsub.f32 %v731_v39, %v782_v36  ;;  %v817_v15 = vsub.f32 %v733_v40, %v782_v36  ;;  %v743_v40 = vld [vmem:[%s1706_s5 + $0x8] sm:$0xff] }
 0x188   : > { %v588_v21 = vpop.f32.mrf.mxu0  ;;  %v701_v22 = vpop.f32.mrf.mxu1  ;;  %v816_v18 = vsub.f32 %v732_v45, %v782_v36  ;;  %v721_v19 = vmax.f32 %v1607_v4, 0.0  ;;  %v714_v4 = vmax.f32 %v1593_v61, 0.0 }
 0x189   : > { %v735_v32 = vmax.f32 %v588_v21, 0.0  ;;  %v737_v33 = vmax.f32 %v701_v22, 0.0  ;;  %v818_v54 = vsub.f32 %v734_v37, %v787_v23  ;;  %v820_v55 = vsub.f32 %v736_v38, %v787_v23 }
 0x18a   : > { %v592_v26 = vpop.f32.mrf.mxu0  ;;  %v705_v27 = vpop.f32.mrf.mxu1  ;;  %v718_v21 = vmax.f32 %v1601_v1, 0.0  ;;  %v720_v22 = vmax.f32 %v1603_v2, 0.0  ;;  %v808_v1 = vsub.f32 %v724_v17, %v772_v11  ;;  %v711_v2 = vmax.f32 %v1589_v59, 0.0 }
 0x18b   : > { %v738_v28 = vmax.f32 %v592_v26, 0.0  ;;  %v740_v29 = vmax.f32 %v705_v27, 0.0  ;;  %v819_v50 = vsub.f32 %v735_v32, %v787_v23  ;;  %v821_v51 = vsub.f32 %v737_v33, %v787_v23  ;;  %v757_v59 = vpop.permute.xlu0 %756 }
 0x18c   : > { %v594_v30 = vpop.f32.mrf.mxu0  ;;  %v707_v31 = vpop.f32.mrf.mxu1  ;;  %v812_v23 = vsub.f32 %v728_v53, %v777_v43  ;;  %v717_v26 = vmax.f32 %v1599_v0, 0.0  ;;  %v809_v27 = vsub.f32 %v725_v13, %v772_v11  ;;  %v805_v63 = vsub.f32 %v721_v19, %v767_v8 }
 0x18d   : > { %v739_v34 = vmax.f32 %v594_v30, 0.0  ;;  %v741_v35 = vmax.f32 %v707_v31, 0.0  ;;  %v822_v46 = vsub.f32 %v738_v28, %v792_v20  ;;  %v824_v47 = vsub.f32 %v740_v29, %v792_v20  ;;  %v762_v0 = vpop.permute.xlu1 %761 }
 0x18e   : > { %v716_v28 = vmax.f32 %v1595_v62, 0.0  ;;  %v806_v29 = vsub.f32 %v722_v12, %v772_v11  ;;  %v713_v30 = vmax.f32 %v1591_v60, 0.0  ;;  %v803_v31 = vsub.f32 %v719_v10, %v767_v8 }
 0x18f   : > { %v823_v41 = vsub.f32 %v739_v34, %v792_v20  ;;  %v825_v42 = vsub.f32 %v741_v35, %v792_v20  ;;  %v813_v20 = vsub.f32 %v729_v49, %v777_v43  ;;  %v710_v32 = vmax.f32 %v1585_v57, 0.0 }
 0x190   : > { %v712_v33 = vmax.f32 %v1587_v58, 0.0  ;;  %v802_v61 = vsub.f32 %v718_v21, %v767_v8  ;;  %v804_v34 = vsub.f32 %v720_v22, %v767_v8  ;;  %v799_v62 = vsub.f32 %v715_v6, %v762_v0  ;;  %v742_v58 = vld [vmem:[%s1706_s5] sm:$0xff] }
 0x191   : > { %855 = vmatprep.subr.mxu0 %v823_v41  ;;  %944 = vmatprep.subr.mxu1 %v825_v42  ;;  %v801_v35 = vsub.f32 %v717_v26, %v762_v0  ;;  %v798_v36 = vsub.f32 %v714_v4, %v762_v0  ;;  %v800_v60 = vsub.f32 %v716_v28, %v762_v0  ;;  %v744_v41 = vld [vmem:[%s1706_s5 + $0x10] sm:$0xff]  ;;  %v745_v42 = vld [vmem:[%s1706_s5 + $0x18] sm:$0xff]  ;;  %v1040_v49 = vpop.permute.xlu1 %1039 }
 0x192   : > { %856 = vmatpush1.msra.mxu0 %v822_v46  ;;  %945 = vmatpush1.msra.mxu1 %v824_v47  ;;  %v795_v37 = vsub.f32 %v711_v2, %v757_v59  ;;  %v797_v38 = vsub.f32 %v713_v30, %v757_v59  ;;  %v794_v57 = vsub.f32 %v710_v32, %v757_v59 }
 0x193   : > { %857 = vmatprep.subr.mxu0 %v819_v50  ;;  %946 = vmatprep.subr.mxu1 %v821_v51  ;;  %v796_v39 = vsub.f32 %v712_v33, %v757_v59 }
 0x194   : > { %858 = vmatpush1.msra.mxu0 %v818_v54  ;;  %947 = vmatpush1.msra.mxu1 %v820_v55 }
 0x195   : > { %859 = vmatprep.subr.mxu0 %v815_v14  ;;  %948 = vmatprep.subr.mxu1 %v817_v15 }
 0x196   : > { %860 = vmatpush1.msra.mxu0 %v814_v9  ;;  %949 = vmatpush1.msra.mxu1 %v816_v18 }
 0x197   : > { %861 = vmatprep.subr.mxu0 %v811_v7  ;;  %950 = vmatprep.subr.mxu1 %v813_v20  ;;  %v1050_v20 = vpop.permute.xlu1 %1049 }
 0x198   : > { %862 = vmatpush1.msra.mxu0 %v810_v5  ;;  %951 = vmatpush1.msra.mxu1 %v812_v23 }
 0x199   : > { %863 = vmatprep.subr.mxu0 %v807_v3  ;;  %952 = vmatprep.subr.mxu1 %v809_v27 }
 0x19a   : > { %864 = vmatpush1.msra.mxu0 %v806_v29  ;;  %953 = vmatpush1.msra.mxu1 %v808_v1 }
 0x19b   : > { %865 = vmatprep.subr.mxu0 %v803_v31  ;;  %954 = vmatprep.subr.mxu1 %v805_v63 }
 0x19c   : > { %866 = vmatpush1.msra.mxu0 %v802_v61  ;;  %955 = vmatpush1.msra.mxu1 %v804_v34 }
 0x19d   : > { %867 = vmatprep.subr.mxu0 %v799_v62  ;;  %956 = vmatprep.subr.mxu1 %v801_v35 }
 0x19e   : > { %868 = vmatpush1.msra.mxu0 %v798_v36  ;;  %957 = vmatpush1.msra.mxu1 %v800_v60 }
 0x19f   : > { %869 = vmatprep.subr.mxu0 %v795_v37  ;;  %958 = vmatprep.subr.mxu1 %v797_v38 }
 0x1a0   : > { %870 = vmatpush1.msra.mxu0 %v794_v57  ;;  %959 = vmatpush1.msra.mxu1 %v796_v39 }
 0x1a1   : > { %1236 = vmatmul.mubr.msk.f32.vlgmr.msra.gmra.mxu0 %vm826_vm1, %v742_v58  ;;  %1240 = vmatmul.mubr.msk.f32.vlgmr.msra.gmra.mxu1 %vm826_vm1, %v742_v58 }
 0x1a2   : > { %909 = vmatprep.mubr.f32.mxu0 %v1357_v16  ;;  %998 = vmatprep.mubr.f32.mxu1 %v1357_v16 }
 0x1a5   : > { %1237 = vmatmul.mubr.msk.f32.gmra.mxu0 %vm826_vm1, %v743_v40  ;;  %1241 = vmatmul.mubr.msk.f32.gmra.mxu1 %vm826_vm1, %v743_v40 }
 0x1a6   : > { %915 = vmatprep.mubr.f32.mxu0 %v1357_v16  ;;  %1004 = vmatprep.mubr.f32.mxu1 %v1357_v16 }
 0x1a9   : > { %1238 = vmatmul.mubr.msk.f32.gmra.mxu0 %vm826_vm1, %v744_v41  ;;  %1242 = vmatmul.mubr.msk.f32.gmra.mxu1 %vm826_vm1, %v744_v41 }
 0x1aa   : > { %921 = vmatprep.mubr.f32.mxu0 %v1357_v16  ;;  %1010 = vmatprep.mubr.f32.mxu1 %v1357_v16  ;;  %v1045_v16 = vpop.permute.xlu0 %1044 }
 0x1ad   : > { %1239 = vmatmul.mubr.msk.f32.gmra.mxu0 %vm826_vm1, %v745_v42  ;;  %1243 = vmatmul.mubr.msk.f32.gmra.mxu1 %vm826_vm1, %v745_v42 }
 0x1ae   : > { %v1055_v28 = vpop.permute.xlu0 %1054 }
 0x261   : > { %v905_v43 = vpop.f32.mrf.mxu0  ;;  %v994_v44 = vpop.f32.mrf.mxu1 }
 0x262   : > { %v1017_v54 = vmax.f32 %v905_v43, 0.0  ;;  %v1019_v55 = vmax.f32 %v994_v44, 0.0 }
 0x263   : > { %v907_v45 = vpop.f32.mrf.mxu0  ;;  %v996_v46 = vpop.f32.mrf.mxu1 }
 0x264   : > { %v1018_v17 = vmax.f32 %v907_v45, 0.0  ;;  %v1020_v9 = vmax.f32 %v996_v46, 0.0  ;;  %v1057_v8 = vmul.f32 %v1040_v49, %v1017_v54  ;;  %v1059_v21 = vmul.f32 %v1040_v49, %v1019_v55 }
 0x265   : > { %v911_v47 = vpop.f32.mrf.mxu0  ;;  %v1000_v48 = vpop.f32.mrf.mxu1 }
 0x266   : > { %v1021_v50 = vmax.f32 %v911_v47, 0.0  ;;  %v1023_v51 = vmax.f32 %v1000_v48, 0.0  ;;  %v1058_v31 = vmul.f32 %v1040_v49, %v1018_v17  ;;  %v1060_v63 = vmul.f32 %v1040_v49, %v1020_v9 }
 0x267   : > { %v913_v52 = vpop.f32.mrf.mxu0  ;;  %v1002_v53 = vpop.f32.mrf.mxu1 }
 0x268   : > { %v1022_v56 = vmax.f32 %v913_v52, 0.0  ;;  %v1024_v13 = vmax.f32 %v1002_v53, 0.0  ;;  %v1061_v11 = vmul.f32 %v1045_v16, %v1021_v50  ;;  %v1063_v12 = vmul.f32 %v1045_v16, %v1023_v51 }
 0x269   : > { %v917_v14 = vpop.f32.mrf.mxu0  ;;  %v1006_v15 = vpop.f32.mrf.mxu1  ;;  %v1358_v53 = vmov 1966171168  }
 0x26a   : > { %v1025_v18 = vmax.f32 %v917_v14, 0.0  ;;  %v1027_v10 = vmax.f32 %v1006_v15, 0.0  ;;  %v1062_v23 = vmul.f32 %v1045_v16, %v1022_v56  ;;  %v1064_v6 = vmul.f32 %v1045_v16, %v1024_v13 }
 0x26b   : > { %v919_v19 = vpop.f32.mrf.mxu0  ;;  %v1008_v7 = vpop.f32.mrf.mxu1  ;;  %v1073_v29 = vadd.f32 %v1061_v11, %v1057_v8  ;;  %v1091_v1 = vadd.f32 %v1063_v12, %v1059_v21  ;;  %v1116_v16 = vunpack.c.l.s4 %v1358_v53 }
 0x26c   : > { %v1026_v22 = vmax.f32 %v919_v19, 0.0  ;;  %v1028_v5 = vmax.f32 %v1008_v7, 0.0  ;;  %v1065_v26 = vmul.f32 %v1050_v20, %v1025_v18  ;;  %v1067_v3 = vmul.f32 %v1050_v20, %v1027_v10 }
 0x26d   : > { %v923_v27 = vpop.f32.mrf.mxu0  ;;  %v1012_v4 = vpop.f32.mrf.mxu1  ;;  %v1082_v36 = vadd.f32 %v1062_v23, %v1058_v31  ;;  %v1100_v60 = vadd.f32 %v1064_v6, %v1060_v63  ;;  %v1117_v11 = vunpack.c.0.s8 %v1116_v16 }
 0x26e   : > { %v1029_v2 = vmax.f32 %v923_v27, 0.0  ;;  %v1031_v30 = vmax.f32 %v1012_v4, 0.0  ;;  %v1066_v0 = vmul.f32 %v1050_v20, %v1026_v22  ;;  %v1068_v32 = vmul.f32 %v1050_v20, %v1028_v5 }
 0x26f   : > { %v925_v33 = vpop.f32.mrf.mxu0  ;;  %v1014_v61 = vpop.f32.mrf.mxu1  ;;  %v1074_v34 = vadd.f32 %v1073_v29, %v1065_v26  ;;  %v1092_v62 = vadd.f32 %v1091_v1, %v1067_v3  ;;  %v1120_v7 = vsub.s32 %v1117_v11, %v1520_v25 }
 0x270   : > { %v1069_v35 = vmul.f32 %v1055_v28, %v1029_v2  ;;  %v1071_v59 = vmul.f32 %v1055_v28, %v1031_v30  ;;  %v1030_v37 = vmax.f32 %v925_v33, 0.0  ;;  %v1032_v38 = vmax.f32 %v1014_v61, 0.0 }
 0x271   : > { %v1083_v58 = vadd.f32 %v1082_v36, %v1066_v0  ;;  %v1101_v40 = vadd.f32 %v1100_v60, %v1068_v32 }
 0x272   : > { %v1075_v57 = vadd.f32 %v1074_v34, %v1069_v35  ;;  %v1093_v39 = vadd.f32 %v1092_v62, %v1071_v59  ;;  %v1070_v41 = vmul.f32 %v1055_v28, %v1030_v37  ;;  %v1072_v42 = vmul.f32 %v1055_v28, %v1032_v38 }
 0x274   : > { %v1076_v43 = vrot.slane %v1075_v57, 4  ;;  %v1094_v44 = vrot.slane %v1093_v39, 4  ;;  %v1084_v45 = vadd.f32 %v1083_v58, %v1070_v41  ;;  %v1102_v46 = vadd.f32 %v1101_v40, %v1072_v42 }
 0x276   : > { %v1077_v47 = vadd.f32 %v1076_v43, %v1075_v57  ;;  %v1095_v48 = vadd.f32 %v1094_v44, %v1093_v39  ;;  %v1085_v49 = vrot.slane %v1084_v45, 4  ;;  %v1103_v50 = vrot.slane %v1102_v46, 4 }
 0x278   : > { %v1078_v51 = vrot.slane %v1077_v47, 2  ;;  %v1096_v52 = vrot.slane %v1095_v48, 2  ;;  %v1086_v54 = vadd.f32 %v1085_v49, %v1084_v45  ;;  %v1104_v55 = vadd.f32 %v1103_v50, %v1102_v46 }
 0x27a   : > { %v1079_v56 = vadd.f32 %v1078_v51, %v1077_v47  ;;  %v1097_v13 = vadd.f32 %v1096_v52, %v1095_v48  ;;  %v1087_v14 = vrot.slane %v1086_v54, 2  ;;  %v1105_v15 = vrot.slane %v1104_v55, 2 }
 0x27c   : > { %v1080_v12 = vrot.slane %v1079_v56, 1  ;;  %v1098_v17 = vrot.slane %v1097_v13, 1  ;;  %v1088_v9 = vadd.f32 %v1087_v14, %v1086_v54  ;;  %v1106_v18 = vadd.f32 %v1105_v15, %v1104_v55 }
 0x27e   : > { %v1089_v10 = vrot.slane %v1088_v9, 1  ;;  %v1107_v19 = vrot.slane %v1106_v18, 1  ;;  %v1081_v20 = vadd.f32 %v1080_v12, %v1079_v56  ;;  %v1099_v8 = vadd.f32 %v1098_v17, %v1097_v13 }
 0x280   : > { %v1090_v21 = vadd.f32 %v1089_v10, %v1088_v9  ;;  %v1108_v22 = vadd.f32 %v1107_v19, %v1106_v18 }
 0x282   : > { %v1113_v5 = vcombine.low %v1081_v20, %v1090_v21  ;;  %v1114_v23 = vcombine.low %v1099_v8, %v1108_v22 }
 0x284   : > { %v1121_v6 = vrot.slane %v1113_v5, %v1120_v7  ;;  %v1128_v26 = vrot.slane %v1114_v23, %v1120_v7 }
 0x286   : > { %v1129_v3 = vcombine.low %v1121_v6, %v1128_v26 }
 0x288   : > { %v1136_v27 = vrot.slane %v1129_v3, %v1120_v7 }
 0x28a   : > { %1142 = vst.msk [vmem:[%s299_s19] sm:$0xf] %vm1140_vm2, %v1136_v27 }
 0x28b   : > { %1307 = shalt.err (!%p1304_p3)
}
 0x28c   : > { %s1308_s28 = scalar_lea.hbm %s1156_s23, 64  ;;  %s1312_s14 = scalar_lea.hbm %s1709_s8, 128 }
 0x28d   : > { %p1309_p4 = scmp.ne.s32.totalorder %s1156_s23, %s1308_s28  ;;  %p1313_p9 = scmp.lt.s32.totalorder %s1156_s23, %s1709_s8 }
 0x28e   : > { %p1314_p10 = scmp.lt.s32.totalorder %s1312_s14, %s1308_s28 }
 0x28f   : > { %p1310_p7 = pnand %p1309_p4, %p1446_p5 }
 0x290   : > { %p1315_p11 = por %p1314_p10, %p1313_p9 }
 0x291   : > { %p1311_p8 = pneg %p1310_p7 }
 0x293   : > { %p1316_p12 = pnand %p1315_p11, %p1311_p8 }
 0x295   : > { %1319 = shalt.err (!%p1316_p12)
}
 0x296   : > { %1250 = dma.vmem_to_hbm [thread:$0]  (%p1446_p5), %s1159_s20, 64, %s1156_s23, %s1144_s24  }
 0x297 PF: > { %p1256_p13 = scmp.ge.s32.totalorder %s1354_s10, 2  ;;  %s1170_s21 = sand.u32 1, %s1342_s29  }
 0x298   : > { %s1171_s22 = scalar_lea.sflag [#allocation4], %s1170_s21 }
 0x299   : > { %p1253_p0 = pnand %p1256_p13, %p1450_p6 }
 0x29b   : > { %p1254_p1 = pneg %p1253_p0 }
 0x29d   : > { %1337 = dma.done.wait (%p1254_p1), %s1171_s22, 64  }
 0x29e   : > { %1339 = vsyncadd (%p1254_p1), %s1171_s22, 4294967232  ;;  %p20_p2 = scmp.ge.s32.totalorder %s1433_s12, 4   ;;  %s1712_s29 = smov %s1346_s30 }
 0x29f   : > { %s1713_s30 = smov %s1350_s9  ;;  %s1714_s9 = smov %s1444_s15 }
 0x2a0   : > { %s1715_s10 = smov %s1433_s12  ;;  %22 = sbr.rel (!%p20_p2) target bundleno = 6 (0x6), region = 87 }
 0x2a5   :  { %1176 = vsyncpa [#allocation4], 1 }
 0x2a6   :  { %1178 = vsyncpa [#allocation4 + $0x1], 1 }

</bundles_post_ra>
